<compile_context>
chip_gen: v7x
topology: tpu7x:2x2x1
jax: 0.10.0
libtpu: 0.0.40
codegen_flags: <defaults>
</compile_context>

<pallas_src>
import math

import jax
import jax.numpy as jnp
from jax import lax
from jax.experimental import pallas as pl
from jax.experimental.pallas import tpu as pltpu


def svd_head_kernel(se_ref, te_ref, pts_ref, out_ref):
    """One grid step == `bt` batch elements.

    se_ref, te_ref : (bt, d_k, N) bf16   source / target embeddings
    pts_ref        : (bt, 8, N)   f32    rows 0:3 = tgt, row 3 = 1.0,
                                         rows 4:7 = src, row 7 = 0.0
    out_ref        : (bt, 8, 128) f32    [:, :3, :3]  = H
                                         [:, :3, 3:4] = src mean
                                         [:, :3, 4:5] = src_corr mean
    """
    bt, d_k, _ = se_ref.shape
    inv_sqrt_dk = 1.0 / math.sqrt(d_k)

    out_ref[...] = jnp.zeros_like(out_ref)

    for b in range(bt):  # bt is small; unrolled at trace time for LLO visibility
        se = se_ref[b] * inv_sqrt_dk          # (d_k, N) bf16, scale folded here
        te = te_ref[b]                        # (d_k, N) bf16
        pts = pts_ref[b]                      # (8, N)  f32, one full-tile load
        tgt1 = pts[0:4, :]                    # (4, N)  tgt rows + ones row
        src = pts[4:7, :]                     # (3, N)

        # scores = src_emb^T @ tgt_emb / sqrt(d_k) -> (N, N) f32.
        # Contract dim 0 of both operands: no explicit transpose materialized.
        s = lax.dot_general(se, te, (((0,), (0,)), ((), ())),
                            preferred_element_type=jnp.float32)

        # Numerically-stable, *unnormalized* softmax over the last dim.
        m = jnp.max(s, axis=-1, keepdims=True)
        e = jnp.exp(s - m)                    # (N, N) f32

        # [tgt ; 1] @ e^T -> (4, N): rows 0..2 = unnormalized src_corr,
        # row 3 = softmax row sums (already in the lane-major layout we need).
        raw = lax.dot_general(tgt1, e, (((1,), (1,)), ((), ())),
                              preferred_element_type=jnp.float32)
        inv_l = pl.reciprocal(raw[3:4, :], approx=True)        # (1, N) on EUP
        src_corr = raw[0:3, :] * inv_l                         # (3, N)

        src_mean = jnp.mean(src, axis=1, keepdims=True)            # (3, 1)
        src_corr_mean = jnp.mean(src_corr, axis=1, keepdims=True)  # (3, 1)

        # H = (src - mean) @ src_corr^T.  Centering src_corr is unnecessary:
        # its mean term multiplies the already-centered src and cancels.
        h = lax.dot_general(src - src_mean, src_corr,
                            (((1,), (1,)), ((), ())),
                            preferred_element_type=jnp.float32)    # (3, 3)

        out_ref[b, 0:3, 0:3] = h
        out_ref[b, 0:3, 3:4] = src_mean
        out_ref[b, 0:3, 4:5] = src_corr_mean


def _pick_block_b(batch, d_k, n, budget_bytes=16 * 1024 * 1024, cap=16):
    """Largest divisor of `batch` (<= cap) whose per-step working set fits."""
    per_batch = (
        8 * d_k * n        # 2 bf16 embedding tiles, double-buffered
        + 64 * n           # packed points f32 tile, double-buffered
        + 8 * n * n        # scores + exp f32 intermediates
        + 8 * 1024         # merged output block, double-buffered
    )
    best = 1
    for cand in range(1, min(batch, cap) + 1):
        if batch % cand == 0 and cand * per_batch <= budget_bytes:
            best = cand
    return best


def svd_head(src_embedding, tgt_embedding, src, tgt, input_shape="bnc"):
    """Forward pass of SVDHead.

    src_embedding, tgt_embedding : (B, d_k, N)
    src, tgt                     : (B, N, 3) if input_shape == 'bnc'
                                   else (B, 3, N)
    returns (R, t) with R: (B, 3, 3), t: (B, 3)
    """
    if input_shape == "bnc":
        src = jnp.transpose(src, (0, 2, 1))   # -> (B, 3, N)
        tgt = jnp.transpose(tgt, (0, 2, 1))

    B, d_k, N = src_embedding.shape

    # bf16 MXU operands for the big matmul (f32 accumulation in-kernel);
    # points stay f32, packed into one sublane-aligned 8-row block:
    # rows 0:3 = tgt, row 3 = ones (for softmax row sums), rows 4:7 = src.
    se = src_embedding.astype(jnp.bfloat16)
    te = tgt_embedding.astype(jnp.bfloat16)
    pts = jnp.concatenate(
        [tgt.astype(jnp.float32), jnp.ones((B, 1, N), jnp.float32),
         src.astype(jnp.float32), jnp.zeros((B, 1, N), jnp.float32)],
        axis=1,
    )                                                                # (B, 8, N)

    bt = _pick_block_b(B, d_k, N)
    grid = (B // bt,)

    # TODO(synk): for large N (N^2 f32 intermediates > ~32 MiB, esp. v7x with
    # 64 MiB VMEM) the target axis should be tiled with an online-softmax
    # inner loop; not needed at these shapes.
    out = pl.pallas_call(
        svd_head_kernel,
        out_shape=jax.ShapeDtypeStruct((B, 8, 128), jnp.float32),
        grid_spec=pltpu.PrefetchScalarGridSpec(
            num_scalar_prefetch=0,
            grid=grid,
            in_specs=[
                pl.BlockSpec((bt, d_k, N), lambda i: (i, 0, 0)),
                pl.BlockSpec((bt, d_k, N), lambda i: (i, 0, 0)),
                pl.BlockSpec((bt, 8, N), lambda i: (i, 0, 0)),
            ],
            out_specs=pl.BlockSpec((bt, 8, 128), lambda i: (i, 0, 0)),
        ),
        compiler_params=pltpu.CompilerParams(
            dimension_semantics=("parallel",),
            vmem_limit_bytes=64 * 1024 * 1024,
        ),
    )(se, te, pts)

    H = out[:, 0:3, 0:3]              # (B, 3, 3)
    src_mean = out[:, 0:3, 3:4]       # (B, 3, 1)
    src_corr_mean = out[:, 0:3, 4:5]  # (B, 3, 1)

    # --- per-batch 3x3 SVD + reflection fix (plain JAX glue) -----------------
    # TODO(synk): 3x3 batched SVD / det have no Pallas TPU primitive; kept in XLA.
    # torch.svd: H = U diag(S) V^T ; jnp.linalg.svd: H = U diag(S) Vh, so V = Vh^T
    U, S, Vh = jnp.linalg.svd(H)
    V = jnp.swapaxes(Vh, -1, -2)
    Ut = jnp.swapaxes(U, -1, -2)

    R0 = jnp.matmul(V, Ut)
    dets = jnp.linalg.det(R0)

    # self.reflect = eye(3) with [2,2] = -1  (deterministic, non-trainable)
    reflect = jnp.diag(jnp.array([1.0, 1.0, -1.0], dtype=jnp.float32))
    V_fixed = jnp.where(dets[:, None, None] < 0.0, jnp.matmul(V, reflect), V)
    R = jnp.matmul(V_fixed, Ut)                              # (B, 3, 3)

    t = jnp.matmul(-R, src_mean) + src_corr_mean             # (B, 3, 1)
    return R, t.reshape(B, 3)


if __name__ == "__main__":
    key = jax.random.PRNGKey(0)
    B, d_k, N = 2, 32, 16
    k1, k2, k3, k4 = jax.random.split(key, 4)

    src_embedding = jax.random.normal(k1, (B, d_k, N), dtype=jnp.float32)
    tgt_embedding = jax.random.normal(k2, (B, d_k, N), dtype=jnp.float32)
    src = jax.random.normal(k3, (B, N, 3), dtype=jnp.float32)  # 'bnc' layout
    tgt = jax.random.normal(k4, (B, N, 3), dtype=jnp.float32)

    R, t = svd_head(src_embedding, tgt_embedding, src, tgt, input_shape="bnc")
    jax.block_until_ready((R, t))

    assert R.shape == (B, 3, 3) and t.shape == (B, 3)
    # rotations should be orthonormal with det = +1
    eye_err = jnp.max(jnp.abs(jnp.matmul(R, jnp.swapaxes(R, -1, -2)) - jnp.eye(3)))
    det_err = jnp.max(jnp.abs(jnp.linalg.det(R) - 1.0))
    assert float(eye_err) < 1e-3 and float(det_err) < 1e-3

    print("KERNEL_OK")
</pallas_src>

<mosaic_0001>
module attributes {stable_mosaic.version = 11 : i64} {
  func.func @svd_head_kernel(%arg0: i32, %arg1: memref<2x32x16xbf16, #tpu.memory_space<vmem>>, %arg2: memref<2x32x16xbf16, #tpu.memory_space<vmem>>, %arg3: memref<2x8x16xf32, #tpu.memory_space<vmem>>, %arg4: memref<2x8x128xf32, #tpu.memory_space<vmem>>) attributes {dimension_semantics = [#tpu.dimension_semantics<parallel>], iteration_bounds = array<i64: 1>, scalar_prefetch = 0 : i64, scratch_operands = 0 : i64, tpu.core_type = #tpu.core_type<tc>, window_params = [{transform_indices = @transform_0, window_bounds = array<i64: 2, 32, 16>}, {transform_indices = @transform_1, window_bounds = array<i64: 2, 32, 16>}, {transform_indices = @transform_2, window_bounds = array<i64: 2, 8, 16>}, {transform_indices = @transform_3, window_bounds = array<i64: 2, 8, 128>}]} {
    %cst = arith.constant 0.000000e+00 : f32
    %0 = vector.broadcast %cst : f32 to vector<2x8x128xf32>
    %c0 = arith.constant 0 : index
    %c0_0 = arith.constant 0 : index
    %c0_1 = arith.constant 0 : index
    %1 = vector.load %arg4[%c0, %c0_0, %c0_1] : memref<2x8x128xf32, #tpu.memory_space<vmem>>, vector<2x8x128xf32>
    tpu.vector_store %arg4[%c0, %c0_0, %c0_1], %0 {strides = array<i32>} : memref<2x8x128xf32, #tpu.memory_space<vmem>>, vector<2x8x128xf32>,
    %c0_2 = arith.constant 0 : index
    %c0_3 = arith.constant 0 : index
    %c0_4 = arith.constant 0 : index
    %2 = vector.load %arg1[%c0_2, %c0_3, %c0_4] : memref<2x32x16xbf16, #tpu.memory_space<vmem>>, vector<1x32x16xbf16>
    %3 = vector.shape_cast %2 : vector<1x32x16xbf16> to vector<32x16xbf16>
    %cst_5 = arith.constant 1.767580e-01 : bf16
    %4 = vector.broadcast %cst_5 : bf16 to vector<32x16xbf16>
    %5 = arith.mulf %3, %4 : vector<32x16xbf16>
    %c0_6 = arith.constant 0 : index
    %c0_7 = arith.constant 0 : index
    %c0_8 = arith.constant 0 : index
    %6 = vector.load %arg2[%c0_6, %c0_7, %c0_8] : memref<2x32x16xbf16, #tpu.memory_space<vmem>>, vector<1x32x16xbf16>
    %7 = vector.shape_cast %6 : vector<1x32x16xbf16> to vector<32x16xbf16>
    %c0_9 = arith.constant 0 : index
    %c0_10 = arith.constant 0 : index
    %c0_11 = arith.constant 0 : index
    %8 = vector.load %arg3[%c0_9, %c0_10, %c0_11] : memref<2x8x16xf32, #tpu.memory_space<vmem>>, vector<1x8x16xf32>
    %9 = vector.shape_cast %8 : vector<1x8x16xf32> to vector<8x16xf32>
    %10 = vector.extract_strided_slice %9 {offsets = [0, 0], sizes = [4, 16], strides = [1, 1]} : vector<8x16xf32> to vector<4x16xf32>
    %11 = vector.extract_strided_slice %9 {offsets = [4, 0], sizes = [3, 16], strides = [1, 1]} : vector<8x16xf32> to vector<3x16xf32>
    %cst_12 = arith.constant dense<0.000000e+00> : vector<16x16xf32>
    %12 = tpu.matmul %5, %7, %cst_12 {dimension_numbers = #tpu.dot_dimension_numbers<[0], [0], [1], [1], [0, 1, 1, 1], [], []>} : vector<32x16xbf16>, vector<32x16xbf16>, vector<16x16xf32> -> vector<16x16xf32>
    %cst_13 = arith.constant dense<0xFF800000> : vector<16xf32>
    %13 = vector.multi_reduction <maximumf>, %12, %cst_13 [1] : vector<16x16xf32> to vector<16xf32>
    %14 = vector.shape_cast %13 : vector<16xf32> to vector<16x1xf32>
    %15 = vector.broadcast %14 : vector<16x1xf32> to vector<16x16xf32>
    %16 = arith.subf %12, %15 : vector<16x16xf32>
    %17 = math.exp %16 : vector<16x16xf32>
    %cst_14 = arith.constant dense<0.000000e+00> : vector<4x16xf32>
    %18 = tpu.matmul %10, %17, %cst_14 {dimension_numbers = #tpu.dot_dimension_numbers<[1], [1], [0], [0], [0, 0, 1, 0], [], []>} : vector<4x16xf32>, vector<16x16xf32>, vector<4x16xf32> -> vector<4x16xf32>
    %19 = vector.extract_strided_slice %18 {offsets = [3, 0], sizes = [1, 16], strides = [1, 1]} : vector<4x16xf32> to vector<1x16xf32>
    %20 = tpu.reciprocal %19 {approx = true} : vector<1x16xf32> -> vector<1x16xf32>
    %21 = vector.extract_strided_slice %18 {offsets = [0, 0], sizes = [3, 16], strides = [1, 1]} : vector<4x16xf32> to vector<3x16xf32>
    %22 = vector.broadcast %20 : vector<1x16xf32> to vector<3x16xf32>
    %23 = arith.mulf %21, %22 : vector<3x16xf32>
    %cst_15 = arith.constant dense<0.000000e+00> : vector<3xf32>
    %24 = vector.multi_reduction <add>, %11, %cst_15 [1] : vector<3x16xf32> to vector<3xf32>
    %25 = vector.shape_cast %24 : vector<3xf32> to vector<3x1xf32>
    %cst_16 = arith.constant 1.600000e+01 : f32
    %26 = vector.broadcast %cst_16 : f32 to vector<3x1xf32>
    %27 = arith.divf %25, %26 : vector<3x1xf32>
    %cst_17 = arith.constant dense<0.000000e+00> : vector<3xf32>
    %28 = vector.multi_reduction <add>, %23, %cst_17 [1] : vector<3x16xf32> to vector<3xf32>
    %29 = vector.shape_cast %28 : vector<3xf32> to vector<3x1xf32>
    %cst_18 = arith.constant 1.600000e+01 : f32
    %30 = vector.broadcast %cst_18 : f32 to vector<3x1xf32>
    %31 = arith.divf %29, %30 : vector<3x1xf32>
    %32 = vector.broadcast %27 : vector<3x1xf32> to vector<3x16xf32>
    %33 = arith.subf %11, %32 : vector<3x16xf32>
    %cst_19 = arith.constant dense<0.000000e+00> : vector<3x3xf32>
    %34 = tpu.matmul %33, %23, %cst_19 {dimension_numbers = #tpu.dot_dimension_numbers<[1], [1], [0], [0], [0, 0, 1, 0], [], []>} : vector<3x16xf32>, vector<3x16xf32>, vector<3x3xf32> -> vector<3x3xf32>
    %c0_20 = arith.constant 0 : index
    %c0_21 = arith.constant 0 : index
    %c0_22 = arith.constant 0 : index
    %35 = vector.load %arg4[%c0_20, %c0_21, %c0_22] : memref<2x8x128xf32, #tpu.memory_space<vmem>>, vector<1x3x3xf32>
    %36 = vector.shape_cast %35 : vector<1x3x3xf32> to vector<3x3xf32>
    %37 = vector.shape_cast %34 : vector<3x3xf32> to vector<1x3x3xf32>
    tpu.vector_store %arg4[%c0_20, %c0_21, %c0_22], %37 {strides = array<i32>} : memref<2x8x128xf32, #tpu.memory_space<vmem>>, vector<1x3x3xf32>,
    %c0_23 = arith.constant 0 : index
    %c0_24 = arith.constant 0 : index
    %c3 = arith.constant 3 : index
    %38 = vector.load %arg4[%c0_23, %c0_24, %c3] : memref<2x8x128xf32, #tpu.memory_space<vmem>>, vector<1x3x1xf32>
    %39 = vector.shape_cast %38 : vector<1x3x1xf32> to vector<3x1xf32>
    %40 = vector.shape_cast %27 : vector<3x1xf32> to vector<1x3x1xf32>
    tpu.vector_store %arg4[%c0_23, %c0_24, %c3], %40 {strides = array<i32>} : memref<2x8x128xf32, #tpu.memory_space<vmem>>, vector<1x3x1xf32>,
    %c0_25 = arith.constant 0 : index
    %c0_26 = arith.constant 0 : index
    %c4 = arith.constant 4 : index
    %41 = vector.load %arg4[%c0_25, %c0_26, %c4] : memref<2x8x128xf32, #tpu.memory_space<vmem>>, vector<1x3x1xf32>
    %42 = vector.shape_cast %41 : vector<1x3x1xf32> to vector<3x1xf32>
    %43 = vector.shape_cast %31 : vector<3x1xf32> to vector<1x3x1xf32>
    tpu.vector_store %arg4[%c0_25, %c0_26, %c4], %43 {strides = array<i32>} : memref<2x8x128xf32, #tpu.memory_space<vmem>>, vector<1x3x1xf32>,
    %c1 = arith.constant 1 : index
    %c0_27 = arith.constant 0 : index
    %c0_28 = arith.constant 0 : index
    %44 = vector.load %arg1[%c1, %c0_27, %c0_28] : memref<2x32x16xbf16, #tpu.memory_space<vmem>>, vector<1x32x16xbf16>
    %45 = vector.shape_cast %44 : vector<1x32x16xbf16> to vector<32x16xbf16>
    %cst_29 = arith.constant 1.767580e-01 : bf16
    %46 = vector.broadcast %cst_29 : bf16 to vector<32x16xbf16>
    %47 = arith.mulf %45, %46 : vector<32x16xbf16>
    %c1_30 = arith.constant 1 : index
    %c0_31 = arith.constant 0 : index
    %c0_32 = arith.constant 0 : index
    %48 = vector.load %arg2[%c1_30, %c0_31, %c0_32] : memref<2x32x16xbf16, #tpu.memory_space<vmem>>, vector<1x32x16xbf16>
    %49 = vector.shape_cast %48 : vector<1x32x16xbf16> to vector<32x16xbf16>
    %c1_33 = arith.constant 1 : index
    %c0_34 = arith.constant 0 : index
    %c0_35 = arith.constant 0 : index
    %50 = vector.load %arg3[%c1_33, %c0_34, %c0_35] : memref<2x8x16xf32, #tpu.memory_space<vmem>>, vector<1x8x16xf32>
    %51 = vector.shape_cast %50 : vector<1x8x16xf32> to vector<8x16xf32>
    %52 = vector.extract_strided_slice %51 {offsets = [0, 0], sizes = [4, 16], strides = [1, 1]} : vector<8x16xf32> to vector<4x16xf32>
    %53 = vector.extract_strided_slice %51 {offsets = [4, 0], sizes = [3, 16], strides = [1, 1]} : vector<8x16xf32> to vector<3x16xf32>
    %cst_36 = arith.constant dense<0.000000e+00> : vector<16x16xf32>
    %54 = tpu.matmul %47, %49, %cst_36 {dimension_numbers = #tpu.dot_dimension_numbers<[0], [0], [1], [1], [0, 1, 1, 1], [], []>} : vector<32x16xbf16>, vector<32x16xbf16>, vector<16x16xf32> -> vector<16x16xf32>
    %cst_37 = arith.constant dense<0xFF800000> : vector<16xf32>
    %55 = vector.multi_reduction <maximumf>, %54, %cst_37 [1] : vector<16x16xf32> to vector<16xf32>
    %56 = vector.shape_cast %55 : vector<16xf32> to vector<16x1xf32>
    %57 = vector.broadcast %56 : vector<16x1xf32> to vector<16x16xf32>
    %58 = arith.subf %54, %57 : vector<16x16xf32>
    %59 = math.exp %58 : vector<16x16xf32>
    %cst_38 = arith.constant dense<0.000000e+00> : vector<4x16xf32>
    %60 = tpu.matmul %52, %59, %cst_38 {dimension_numbers = #tpu.dot_dimension_numbers<[1], [1], [0], [0], [0, 0, 1, 0], [], []>} : vector<4x16xf32>, vector<16x16xf32>, vector<4x16xf32> -> vector<4x16xf32>
    %61 = vector.extract_strided_slice %60 {offsets = [3, 0], sizes = [1, 16], strides = [1, 1]} : vector<4x16xf32> to vector<1x16xf32>
    %62 = tpu.reciprocal %61 {approx = true} : vector<1x16xf32> -> vector<1x16xf32>
    %63 = vector.extract_strided_slice %60 {offsets = [0, 0], sizes = [3, 16], strides = [1, 1]} : vector<4x16xf32> to vector<3x16xf32>
    %64 = vector.broadcast %62 : vector<1x16xf32> to vector<3x16xf32>
    %65 = arith.mulf %63, %64 : vector<3x16xf32>
    %cst_39 = arith.constant dense<0.000000e+00> : vector<3xf32>
    %66 = vector.multi_reduction <add>, %53, %cst_39 [1] : vector<3x16xf32> to vector<3xf32>
    %67 = vector.shape_cast %66 : vector<3xf32> to vector<3x1xf32>
    %cst_40 = arith.constant 1.600000e+01 : f32
    %68 = vector.broadcast %cst_40 : f32 to vector<3x1xf32>
    %69 = arith.divf %67, %68 : vector<3x1xf32>
    %cst_41 = arith.constant dense<0.000000e+00> : vector<3xf32>
    %70 = vector.multi_reduction <add>, %65, %cst_41 [1] : vector<3x16xf32> to vector<3xf32>
    %71 = vector.shape_cast %70 : vector<3xf32> to vector<3x1xf32>
    %cst_42 = arith.constant 1.600000e+01 : f32
    %72 = vector.broadcast %cst_42 : f32 to vector<3x1xf32>
    %73 = arith.divf %71, %72 : vector<3x1xf32>
    %74 = vector.broadcast %69 : vector<3x1xf32> to vector<3x16xf32>
    %75 = arith.subf %53, %74 : vector<3x16xf32>
    %cst_43 = arith.constant dense<0.000000e+00> : vector<3x3xf32>
    %76 = tpu.matmul %75, %65, %cst_43 {dimension_numbers = #tpu.dot_dimension_numbers<[1], [1], [0], [0], [0, 0, 1, 0], [], []>} : vector<3x16xf32>, vector<3x16xf32>, vector<3x3xf32> -> vector<3x3xf32>
    %c1_44 = arith.constant 1 : index
    %c0_45 = arith.constant 0 : index
    %c0_46 = arith.constant 0 : index
    %77 = vector.load %arg4[%c1_44, %c0_45, %c0_46] : memref<2x8x128xf32, #tpu.memory_space<vmem>>, vector<1x3x3xf32>
    %78 = vector.shape_cast %77 : vector<1x3x3xf32> to vector<3x3xf32>
    %79 = vector.shape_cast %76 : vector<3x3xf32> to vector<1x3x3xf32>
    tpu.vector_store %arg4[%c1_44, %c0_45, %c0_46], %79 {strides = array<i32>} : memref<2x8x128xf32, #tpu.memory_space<vmem>>, vector<1x3x3xf32>,
    %c1_47 = arith.constant 1 : index
    %c0_48 = arith.constant 0 : index
    %c3_49 = arith.constant 3 : index
    %80 = vector.load %arg4[%c1_47, %c0_48, %c3_49] : memref<2x8x128xf32, #tpu.memory_space<vmem>>, vector<1x3x1xf32>
    %81 = vector.shape_cast %80 : vector<1x3x1xf32> to vector<3x1xf32>
    %82 = vector.shape_cast %69 : vector<3x1xf32> to vector<1x3x1xf32>
    tpu.vector_store %arg4[%c1_47, %c0_48, %c3_49], %82 {strides = array<i32>} : memref<2x8x128xf32, #tpu.memory_space<vmem>>, vector<1x3x1xf32>,
    %c1_50 = arith.constant 1 : index
    %c0_51 = arith.constant 0 : index
    %c4_52 = arith.constant 4 : index
    %83 = vector.load %arg4[%c1_50, %c0_51, %c4_52] : memref<2x8x128xf32, #tpu.memory_space<vmem>>, vector<1x3x1xf32>
    %84 = vector.shape_cast %83 : vector<1x3x1xf32> to vector<3x1xf32>
    %85 = vector.shape_cast %73 : vector<3x1xf32> to vector<1x3x1xf32>
    tpu.vector_store %arg4[%c1_50, %c0_51, %c4_52], %85 {strides = array<i32>} : memref<2x8x128xf32, #tpu.memory_space<vmem>>, vector<1x3x1xf32>,
    return
  }
  func.func @transform_0(%arg0: i32) -> (i32, i32, i32) {
    %c0_i32 = arith.constant 0 : i32
    %c0_i32_0 = arith.constant 0 : i32
    %c0_i32_1 = arith.constant 0 : i32
    return %arg0, %c0_i32, %c0_i32_0 : i32, i32, i32
  }
  func.func @transform_1(%arg0: i32) -> (i32, i32, i32) {
    %c0_i32 = arith.constant 0 : i32
    %c0_i32_0 = arith.constant 0 : i32
    %c0_i32_1 = arith.constant 0 : i32
    return %arg0, %c0_i32, %c0_i32_0 : i32, i32, i32
  }
  func.func @transform_2(%arg0: i32) -> (i32, i32, i32) {
    %c0_i32 = arith.constant 0 : i32
    %c0_i32_0 = arith.constant 0 : i32
    %c0_i32_1 = arith.constant 0 : i32
    return %arg0, %c0_i32, %c0_i32_0 : i32, i32, i32
  }
  func.func @transform_3(%arg0: i32) -> (i32, i32, i32) {
    %c0_i32 = arith.constant 0 : i32
    %c0_i32_0 = arith.constant 0 : i32
    %c0_i32_1 = arith.constant 0 : i32
    return %arg0, %c0_i32, %c0_i32_0 : i32, i32, i32
  }
}

</mosaic_0001>

<bundles_post_ra>
// kernel: tpu_custom_call.1
= control target key start
LH: loop header
LB: loop body
LE: loop exit
PB: predicated region body
PF: predicated region fallthrough
CT: control target
= control target key end

     0   :  { %8 = vsyncpa [#allocation3], 0  ;;  %s1004_s0 = inlined_call_operand.hbm [shape: bf16[2,32,16], index: 0, kind: input, shape index: {}]   ;;  %s1005_s1 = inlined_call_operand.hbm [shape: bf16[2,32,16], index: 1, kind: input, shape index: {}]   ;;  %s1006_s2 = inlined_call_operand.hbm [shape: f32[2,8,16], index: 2, kind: input, shape index: {}]   ;;  %s1007_s3 = inlined_call_operand.hbm [shape: f32[2,8,128], index: 3, kind: output, shape index: {}]  }
   0x1   :  { %9 = vsyncpa [#allocation6], 0 }
   0x2   :  { %10 = vsyncpa [#allocation4], 0  ;;  %s862_s12 = smov [#allocation5]   ;;  %s863_s14 = smov [#allocation2]  }
   0x3   :  { %s28_s13 = sshll.u32 %s862_s12, 4  ;;  %s16_s15 = sshll.u32 %s863_s14, 4  ;;  %s29_s13 = int_to_ptr.vmem [resolvable:$true] %s28_s13  ;;  %s893_s15 = int_to_ptr.vmem [resolvable:$true] %s16_s15 }
   0x4   :  { %s768_s18 = scalar_lea.hbm %s1005_s1, 512 }
   0x5   :  { %p769_p0 = scmp.ne.s32.totalorder %s1005_s1, %s768_s18  ;;  %p772_p1 = scmp.lt.u32.totalorder %s768_s18, %s1005_s1 }
   0x7   :  { %p774_p2 = pnand %p772_p1, %p769_p0 }
   0x9   :  { %777 = shalt.err (!%p774_p2)
}
   0xa   :  { %s778_s23 = scalar_lea.vmem %s29_s13, 512  ;;  %p783_p4 = scmp.lt.s32.totalorder %s29_s13, %s29_s13 }
   0xb   :  { %p779_p3 = scmp.ne.s32.totalorder %s29_s13, %s778_s23  ;;  %p784_p5 = scmp.lt.s32.totalorder %s778_s23, %s778_s23 }
   0xd   :  { %p785_p6 = por %p784_p5, %p783_p4 }
   0xf   :  { %p786_p7 = pnand %p785_p6, %p779_p3 }
  0x11   :  { %789 = shalt.err (!%p786_p7)
}
  0x12   :  { %s864_s24 = smov 64   ;;  %s865_s25 = smov 4  }
  0x13   :  { %34 = dma.hbm_to_vmem [thread:$0]  %s1005_s1, 512, %s29_s13, [#allocation6], %s864_s24, %s864_s24, %s865_s25  }
  0x14   :  { %s790_s30 = scalar_lea.hbm %s1004_s0, 512 }
  0x15   :  { %p791_p8 = scmp.ne.s32.totalorder %s1004_s0, %s790_s30  ;;  %p794_p9 = scmp.lt.u32.totalorder %s790_s30, %s1004_s0 }
  0x17   :  { %p796_p10 = pnand %p794_p9, %p791_p8 }
  0x19   :  { %799 = shalt.err (!%p796_p10)
}
  0x1a   :  { %s800_s8 = scalar_lea.vmem %s893_s15, 512  ;;  %p805_p12 = scmp.lt.s32.totalorder %s893_s15, %s893_s15 }
  0x1b   :  { %p801_p11 = scmp.ne.s32.totalorder %s893_s15, %s800_s8  ;;  %p806_p13 = scmp.lt.s32.totalorder %s800_s8, %s800_s8 }
  0x1d   :  { %p807_p0 = por %p806_p13, %p805_p12 }
  0x1f   :  { %p808_p1 = pnand %p807_p0, %p801_p11 }
  0x21   :  { %811 = shalt.err (!%p808_p1)
}
  0x22   :  { %22 = dma.hbm_to_vmem [thread:$0]  %s1004_s0, 512, %s893_s15, [#allocation3], %s864_s24, %s864_s24, %s865_s25  }
  0x23   :  { %s866_s10 = smov [#allocation7]   ;;  %s812_s14 = scalar_lea.hbm %s1006_s2, 256 }
  0x24   :  { %s40_s11 = sshll.u32 %s866_s10, 4  ;;  %p813_p2 = scmp.ne.s32.totalorder %s1006_s2, %s812_s14  ;;  %s41_s11 = int_to_ptr.vmem [resolvable:$true] %s40_s11 }
  0x25   :  { %p816_p3 = scmp.lt.u32.totalorder %s812_s14, %s1006_s2 }
  0x27   :  { %p818_p4 = pnand %p816_p3, %p813_p2 }
  0x29   :  { %821 = shalt.err (!%p818_p4)
}
  0x2a   :  { %s822_s20 = scalar_lea.vmem %s41_s11, 256  ;;  %p827_p6 = scmp.lt.s32.totalorder %s41_s11, %s41_s11 }
  0x2b   :  { %p823_p5 = scmp.ne.s32.totalorder %s41_s11, %s822_s20  ;;  %p828_p7 = scmp.lt.s32.totalorder %s822_s20, %s822_s20 }
  0x2d   :  { %p829_p8 = por %p828_p7, %p827_p6 }
  0x2f   :  { %p830_p9 = pnand %p829_p8, %p823_p5 }
  0x31   :  { %833 = shalt.err (!%p830_p9)
}
  0x32   :  { %s867_s0 = smov 128   ;;  %s868_s15 = smov 8  }
  0x33   :  { %46 = dma.hbm_to_vmem [thread:$0]  %s1006_s2, 256, %s41_s11, [#allocation6], %s867_s0, %s867_s0, %s868_s15  }
  0x34   :  { %856 = dma.done.wait [#allocation3], 512  }
  0x35   :  { %857 = vsyncadd [#allocation3], 4294966784 }
  0x36   :  { %858 = dma.done.wait [#allocation6], 768  }
  0x37   :  { %859 = vsyncadd [#allocation6], 4294966528  ;;  %v869_v0 = vmov 0.0   ;;  %vm870_vm0 = vmmov 0   ;;  %v60_v1 = vld [vmem:[#allocation2] sm:$0xf] }
  0x38   :  { %692 = vmatprep.subr.bf16.mxu0 %v869_v0  ;;  %58 = vst [vmem:[#allocation8] sm:$0xff] %v869_v0  ;;  %59 = vst [vmem:[#allocation8 + $0x8] sm:$0xff] %v869_v0  ;;  %696 = vmatprep.mubr.msk.bf16.mxu0 %vm870_vm0, %v869_v0  ;;  %v61_v2 = vld [vmem:[#allocation2 + $0x4] sm:$0xf]  ;;  %v62_v3 = vld [vmem:[#allocation2 + $0x8] sm:$0xf] }
  0x39   :  { %704 = vmatprep.mubr.msk.f32.mxu1 %vm870_vm0, %v869_v0  ;;  %v64_v4 = vmul.bf16 1043676725, %v60_v1  ;;  %v65_v5 = vmul.bf16 1043676725, %v61_v2  ;;  %v63_v6 = vld [vmem:[#allocation2 + $0xc] sm:$0xf]  ;;  %v251_v1 = vlaneseq }
  0x3a   :  { %v66_v7 = vmul.bf16 1043676725, %v62_v3  ;;  %v67_v8 = vmul.bf16 1043676725, %v63_v6  ;;  %v352_v9 = vld [vmem:[#allocation2 + $0x10] sm:$0xf] }
  0x3b   :  { %v656_v10 = vcombine.low %v64_v4, %v65_v5  ;;  %v353_v11 = vld [vmem:[#allocation2 + $0x14] sm:$0xf]  ;;  %v356_v12 = vmul.bf16 1043676725, %v352_v9  ;;  %v752_v14 = vld [vmem:[#allocation5] sm:$0xff]   ;;  %v753_v18 = vld [vmem:[#allocation5 + $0x8] sm:$0xff]  }
  0x3c   :  { %v357_v13 = vmul.bf16 1043676725, %v353_v11  ;;  %v657_v15 = vcombine.low %v66_v7, %v67_v8  ;;  %v354_v16 = vld [vmem:[#allocation2 + $0x18] sm:$0xf]  ;;  %v355_v17 = vld [vmem:[#allocation2 + $0x1c] sm:$0xf]  ;;  %693 = vmatpush3.bf16.msra.mxu0 %v752_v14 }
  0x3d   :  { %85 = vxpose.xlu0.c.b16.start [1/2] (short) (narrow) %v656_v10, 16  ;;  %v358_v20 = vmul.bf16 1043676725, %v354_v16  ;;  %v359_v21 = vmul.bf16 1043676725, %v355_v17  ;;  %694 = vmatprep.subr.bf16.mxu0 %v869_v0  ;;  %vm113_vm1 = vcmask 261120  }
  0x3e   :  { %v666_v19 = vcombine.low %v356_v12, %v357_v13  ;;  %v754_v23 = vld [vmem:[#allocation5 + $0x10] sm:$0xff]   ;;  %v755_v25 = vld [vmem:[#allocation5 + $0x18] sm:$0xff]   ;;  %vm158_vm2 = vcmask 130048   ;;  %v871_v39 = vmov 0.0|0.0   ;;  %v72_v40 = vld [vmem:[#allocation7] sm:$0xff]  ;;  %vm256_vm3 = vcmask 129028  }
  0x3f   :  { %v667_v22 = vcombine.low %v358_v20, %v359_v21  ;;  %732 = vmatprep.subr.bf16.mxu1 %v871_v39  ;;  %v257_v41 = vsel %vm256_vm3, %v72_v40, 0.0  ;;  %vm961_vm4 = vmpackc.low %vm158_vm2, %vm158_vm2  ;;  %v366_v61 = vld [vmem:[#allocation7 + $0x8] sm:$0xff]  ;;  %v252_v3 = vshrl.u32 %v251_v1, 7  ;;  %vm262_vm5 = vcmask 124928   ;;  %s872_s2 = smov [#allocation8]  }
  0x40   :  { %379 = vxpose.xlu1.c.b16.start [1/2] (short) (narrow) %v666_v19, 16  ;;  %695 = vmatpush3.bf16.msra.mxu0 %v753_v18  ;;  %v548_v62 = vsel %vm256_vm3, %v366_v61, 0.0  ;;  %vm345_vm6 = vcmask 18432   ;;  %vm347_vm7 = vcmask 30748   ;;  %vm349_vm8 = vcmask 34848   ;;  %s643_s23 = sshll.u32 %s872_s2, 4  ;;  %s644_s23 = int_to_ptr.vmem [resolvable:$true] %s643_s23 }
  0x41   :  { %86 = vxpose.xlu0.c.b16.end [2/2] (short) (narrow) %v657_v15, 16  ;;  %712 = vmatprep.subr.bf16.mxu0 %v869_v0  ;;  %v253_v6 = vsub.s32 3, %v252_v3  ;;  %s834_s24 = scalar_lea.vmem %s644_s23, 256  ;;  %p839_p11 = scmp.lt.s32.totalorder %s644_s23, %s644_s23 }
  0x42   :  { %p835_p10 = scmp.ne.s32.totalorder %s644_s23, %s834_s24  ;;  %p840_p12 = scmp.lt.s32.totalorder %s834_s24, %s834_s24 }
  0x44   :  { %380 = vxpose.xlu1.c.b16.end [2/2] (short) (narrow) %v667_v22, 16  ;;  %p841_p13 = por %p840_p12, %p839_p11 }
  0x46   :  { %p842_p0 = pnand %p841_p13, %p835_p10 }
  0xa3   :  { %v93_v24 = vpop.trf.xlu0 }
  0xa4   :  { %697 = vmatmul.mubr.msk.bf16.vlgmr.msra.gmra.mrb[0].mxu0 %vm113_vm1, %v93_v24 }
  0xa5   :  { %713 = vmatpush3.bf16.msra.mxu0 %v754_v23  ;;  %716 = vmatprep.mubr.msk.bf16.mxu0 %vm870_vm0, %v869_v0 }
  0xa6   :  { %714 = vmatprep.subr.bf16.mxu0 %v869_v0  ;;  %v387_v26 = vpop.trf.xlu1 }
  0xa9   :  { %715 = vmatpush3.bf16.msra.mxu0 %v755_v25 }
  0xaa   :  { %727 = vmatprep.subr.mxu0 %v869_v0 }
  0xac   :  { %717 = vmatmul.mubr.msk.bf16.vlgmr.msra.gmra.mrb[4].mxu0 %vm113_vm1, %v387_v26 }
  0xad   :  { %729 = vmatprep.mubr.msk.f32.mxu0 %vm870_vm0, %v869_v0 }
 0x177   :  { %v151_v27 = vpop.f32.mrb[0].mxu0 }
 0x178   :  { %v698_v28 = vpop.f32.mrb[1].mxu0  ;;  %v159_v29 = vsel %vm158_vm2, %v151_v27, -inf }
 0x179   :  { %160 = vmax.xlane.f32.xlu0 %v159_v29  ;;  %v154_v30 = vpop.f32.mrb[2].mxu0 }
 0x17a   :  { %v699_v31 = vpop.f32.mrb[3].mxu0  ;;  %v162_v32 = vsel %vm158_vm2, %v154_v30, -inf }
 0x17b   :  { %163 = vmax.xlane.f32.xlu1 %v162_v32 }
 0x17f   :  { %v444_v33 = vpop.f32.mrb[4].mxu0 }
 0x180   :  { %v718_v34 = vpop.f32.mrb[5].mxu0  ;;  %v451_v35 = vsel %vm158_vm2, %v444_v33, -inf }
 0x181   :  { %v447_v36 = vpop.f32.mrb[6].mxu0  ;;  %452 = vmax.xlane.f32.xlu0 %v451_v35 }
 0x182   :  { %v454_v37 = vsel %vm158_vm2, %v447_v36, -inf  ;;  %v719_v38 = vpop.f32.mrb[7].mxu0 }
 0x183   :  { %455 = vmax.xlane.f32.xlu1 %v454_v37 }
 0x185   :  { %258 = vadd.xlane.f32.xlu0 %v257_v41 }
 0x187   :  { %549 = vadd.xlane.f32.xlu1 %v548_v62 }
 0x206   :  { %v161_v42 = vpop.xlane.xlu0 %160 }
 0x207   :  { %v165_v43 = vsub.f32 %v151_v27, %v161_v42 }
 0x208   :  { %v164_v44 = vpop.xlane.xlu1 %163 }
 0x209   :  { %v167_v45 = vmul.f32 1.442695, %v165_v43  ;;  %v166_v46 = vsub.f32 %v154_v30, %v164_v44 }
 0x20b   :  { %v169_v47 = vmul.f32 1.442695, %v166_v46  ;;  %756 = vpow2.f32 %v167_v45 }
 0x20d   :  { %758 = vpow2.f32 %v169_v47 }
 0x20e   :  { %v453_v48 = vpop.xlane.xlu0 %452 }
 0x20f   :  { %v457_v49 = vsub.f32 %v444_v33, %v453_v48 }
 0x210   :  { %v456_v50 = vpop.xlane.xlu1 %455 }
 0x211   :  { %v459_v51 = vmul.f32 1.442695, %v457_v49  ;;  %v458_v52 = vsub.f32 %v447_v36, %v456_v50 }
 0x212   :  { %v259_v4 = vpop.xlane.xlu0 %258 }
 0x213   :  { %760 = vpow2.f32 %v459_v51  ;;  %v461_v53 = vmul.f32 1.442695, %v458_v52  ;;  %v261_v5 = vmul.f32 0.0625, %v259_v4 }
 0x214   :  { %v550_v19 = vpop.xlane.xlu1 %549 }
 0x215   :  { %762 = vpow2.f32 %v461_v53  ;;  %v757_v54 = vpop.eup %756  ;;  %v267_v8 = vsub.f32 %v72_v40, %v261_v5 }
 0x217   :  { %v759_v55 = vpop.eup %758  ;;  %v269_v11 = vrot.slane %v267_v8, 4 }
 0x218   :  { %v733_v57 = vpack.c.bf16 %v759_v55, %v757_v54 }
 0x21a   :  { %735 = vmatpush3.bf16.xpose.msk.msra.mxu1 %vm961_vm4, %v733_v57 }
 0x21b   :  { %707 = vmatprep.subr.mxu1 %v869_v0 }
 0x21d   :  { %v761_v58 = vpop.eup %760 }
 0x21f   :  { %v763_v59 = vpop.eup %762 }
 0x220   :  { %v737_v60 = vpack.c.bf16 %v763_v59, %v761_v58 }
 0x221   :  { %705 = vmatmul.mubr.msk.f32.vlgmr.msra.gmra.mrb[0].mxu1 %vm158_vm2, %v72_v40 }
 0x222   :  { %709 = vmatprep.mubr.msk.f32.mxu1 %vm870_vm0, %v869_v0 }
 0x2f4   :  { %v246_v63 = vpop.f32.mrb[0].mxu1 }
 0x2f5   :  { %764 = vrcp.f32 %v246_v63  ;;  %v706_v2 = vpop.f32.mrb[1].mxu1 }
 0x2ff   :  { %v765_v7 = vpop.eup %764 }
 0x300   :  { %v254_v9 = vrot.slane %v765_v7, %v253_v6 }
 0x302   :  { %v255_v10 = vmul.f32 %v254_v9, %v246_v63 }
 0x304   :  { %708 = vmatpush3.xpose.msk.msra.mxu1 %vm158_vm2, %v255_v10  ;;  %v263_v12 = vsel %vm262_vm5, %v255_v10, 0.0 }
 0x305   :  { %264 = vadd.xlane.f32.xlu0 %v263_v12  ;;  %736 = vmatprep.subr.bf16.mxu1 %v871_v39 }
 0x307   :  { %710 = vmatmul.mubr.msk.f32.vlgmr.msra.gmra.mrb[2].mxu1 %vm158_vm2, %v269_v11 }
 0x308   :  { %739 = vmatpush3.bf16.xpose.msk.msra.mxu1 %vm961_vm4, %v737_v60  ;;  %724 = vmatprep.mubr.msk.f32.mxu1 %vm870_vm0, %v869_v0  ;;  %v551_v0 = vmul.f32 0.0625, %v550_v19 }
 0x30a   :  { %v556_v21 = vsub.f32 %v366_v61, %v551_v0 }
 0x30c   :  { %v558_v24 = vrot.slane %v556_v21, 4 }
 0x30f   :  { %725 = vmatmul.mubr.msk.f32.vlgmr.msra.gmra.mrb[4].mxu1 %vm158_vm2, %v366_v61 }
 0x392   :  { %v265_v13 = vpop.xlane.xlu0 %264 }
 0x393   :  { %v266_v15 = vmul.f32 0.0625, %v265_v13 }
 0x3da   :  { %v341_v14 = vpop.f32.mrb[2].mxu1 }
 0x3db   :  { %346 = vst.msk [vmem:[#allocation8] sm:$0x7] %vm345_vm6, %v341_v14  ;;  %v711_v16 = vpop.f32.mrb[3].mxu1 }
 0x3dc   :  { %348 = vst.msk [vmem:[#allocation8 - $0x4] sm:$0x70] %vm347_vm7, %v261_v5 }
 0x3dd   :  { %350 = vst.msk [vmem:[#allocation8] sm:$0x7] %vm349_vm8, %v266_v15 }
 0x3e2   :  { %v538_v17 = vpop.f32.mrb[4].mxu1 }
 0x3e3   :  { %766 = vrcp.f32 %v538_v17  ;;  %v726_v18 = vpop.f32.mrb[5].mxu1 }
 0x3ed   :  { %v767_v20 = vpop.eup %766 }
 0x3ee   :  { %v546_v22 = vrot.slane %v767_v20, %v253_v6 }
 0x3f0   :  { %v547_v23 = vmul.f32 %v546_v22, %v538_v17 }
 0x3f2   :  { %728 = vmatpush3.xpose.msk.msra.mxu0 %vm158_vm2, %v547_v23  ;;  %v552_v25 = vsel %vm262_vm5, %v547_v23, 0.0 }
 0x3f3   :  { %553 = vadd.xlane.f32.xlu1 %v552_v25 }
 0x3f5   :  { %730 = vmatmul.mubr.msk.f32.vlgmr.msra.gmra.mrb[8].mxu0 %vm158_vm2, %v558_v24 }
 0x480   :  { %v554_v26 = vpop.xlane.xlu1 %553 }
 0x481   :  { %v555_v28 = vmul.f32 0.0625, %v554_v26 }
 0x4c8   :  { %v630_v27 = vpop.f32.mrb[8].mxu0 }
 0x4c9   :  { %635 = vst.msk [vmem:[#allocation8 + $0x8] sm:$0x7] %vm345_vm6, %v630_v27  ;;  %v731_v29 = vpop.f32.mrb[9].mxu0 }
 0x4ca   :  { %636 = vst.msk [vmem:[#allocation8 + $0x4] sm:$0x70] %vm347_vm7, %v551_v0 }
 0x4cb   :  { %637 = vst.msk [vmem:[#allocation8 + $0x8] sm:$0x7] %vm349_vm8, %v555_v28 }
 0x4cc   :  { %845 = shalt.err (!%p842_p0)
}
 0x4cd   :  { %s846_s27 = scalar_lea.hbm %s1007_s3, 256 }
 0x4ce   :  { %p847_p1 = scmp.ne.s32.totalorder %s1007_s3, %s846_s27  ;;  %p850_p2 = scmp.lt.u32.totalorder %s846_s27, %s1007_s3 }
 0x4d0   :  { %p852_p3 = pnand %p850_p2, %p847_p1 }
 0x4d2   :  { %855 = shalt.err (!%p852_p3)
}
 0x4d3   :  { %649 = dma.vmem_to_hbm [thread:$0]  %s644_s23, 256, %s1007_s3, [#allocation4], %s867_s0, %s867_s0, %s868_s15  }
 0x4d4   :  { %860 = dma.done.wait [#allocation4], 256  }
 0x4d5   :  { %861 = vsyncadd [#allocation4], 4294967040 }
 0x4d6   :  { %653 = vsyncpa [#allocation3], 1 }
 0x4d7   :  { %654 = vsyncpa [#allocation6], 1 }
 0x4d8   :  { %655 = vsyncpa [#allocation4], 1 }

</bundles_post_ra>
